<compile_context>
chip_gen: v7x
topology: tpu7x:2x2x1
jax: 0.10.0
libtpu: 0.0.40
codegen_flags: <defaults>
</compile_context>

<pallas_src>
import functools

import jax
import jax.numpy as jnp
from jax.experimental import pallas as pl
from jax.experimental.pallas import tpu as pltpu


def _round_up(x, m):
    return ((x + m - 1) // m) * m


# ----------------------------------------------------------------------------
# Pallas kernel 1: fused squeeze-excitation gate
#   a = sigmoid(relu(g @ W1 + b1) @ W2 + b2)      (all fp32, tiny)
# ----------------------------------------------------------------------------
def _se_gate_kernel(g_ref, w1_ref, b1_ref, w2_ref, b2_ref, a_ref):
    h = jnp.dot(g_ref[...], w1_ref[...], preferred_element_type=jnp.float32)
    h = jnp.maximum(h + b1_ref[...], 0.0)
    z = jnp.dot(h, w2_ref[...], preferred_element_type=jnp.float32) + b2_ref[...]
    a_ref[...] = jax.nn.sigmoid(z)


def se_gate(g, w1, b1, w2, b2):
    """g: (B, C) fp32 pooled features -> (B, C) fp32 channel gate."""
    B, C = g.shape
    Bp = _round_up(max(B, 8), 8)
    if Bp != B:
        g = jnp.pad(g, ((0, Bp - B), (0, 0)))
    Hh = w1.shape[1]

    a = pl.pallas_call(
        _se_gate_kernel,
        out_shape=jax.ShapeDtypeStruct((Bp, C), jnp.float32),
        grid=(1,),
        in_specs=[
            pl.BlockSpec((Bp, C), lambda i: (0, 0)),
            pl.BlockSpec((C, Hh), lambda i: (0, 0)),
            pl.BlockSpec((1, Hh), lambda i: (0, 0)),
            pl.BlockSpec((Hh, C), lambda i: (0, 0)),
            pl.BlockSpec((1, C), lambda i: (0, 0)),
        ],
        out_specs=pl.BlockSpec((Bp, C), lambda i: (0, 0)),
        compiler_params=pltpu.CompilerParams(
            dimension_semantics=("arbitrary",)),
    )(g, w1, b1, w2, b2)
    return a[:B]


# ----------------------------------------------------------------------------
# Pallas kernel 2: bf16 matmul + fused bias epilogue (the 3x3 conv via im2col)
#   Accumulates directly into the resident fp32 output block (no scratch).
# ----------------------------------------------------------------------------
def _conv_mm_kernel(x_ref, w_ref, b_ref, o_ref):
    k = pl.program_id(2)
    part = jnp.dot(x_ref[...], w_ref[...], preferred_element_type=jnp.float32)

    @pl.when(k == 0)
    def _():
        o_ref[...] = part

    @pl.when(k > 0)
    def _():
        o_ref[...] += part

    @pl.when(k == pl.num_programs(2) - 1)
    def _():
        o_ref[...] += b_ref[...]


_K_SINGLE_MAX = 2304   # up to this, K is one full-extent block (no padding at all)
_TK_MULTI = 512        # K tile when a K grid is needed


def _conv_tiles(K, N):
    """Shared between param-build (weight padding) and the forward call."""
    if K <= _K_SINGLE_MAX:
        Kp, TK = K, K
    else:
        TK = _TK_MULTI
        Kp = _round_up(K, TK)
    Np = _round_up(N, 128)
    TN = 256 if Np % 256 == 0 else 128
    return Kp, TK, Np, TN


def conv_matmul(cols, w_mat, bias, n_out):
    """fp32 (cols_bf16 @ w_bf16) + bias, returns [:M, :n_out]."""
    M, K = cols.shape
    Kp, TK, Np, TN = _conv_tiles(K, n_out)
    assert w_mat.shape == (Kp, Np), (w_mat.shape, Kp, Np)
    assert bias.shape == (1, Np)

    TM = min(256, _round_up(M, 8))
    Mp = _round_up(M, TM)
    if (Mp, Kp) != (M, K):
        cols = jnp.pad(cols, ((0, Mp - M), (0, Kp - K)))

    out = pl.pallas_call(
        _conv_mm_kernel,
        out_shape=jax.ShapeDtypeStruct((Mp, Np), jnp.float32),
        grid=(Mp // TM, Np // TN, Kp // TK),
        in_specs=[
            pl.BlockSpec((TM, TK), lambda i, j, k: (i, k)),
            pl.BlockSpec((TK, TN), lambda i, j, k: (k, j)),
            pl.BlockSpec((1, TN), lambda i, j, k: (0, j)),
        ],
        out_specs=pl.BlockSpec((TM, TN), lambda i, j, k: (i, j)),
        compiler_params=pltpu.CompilerParams(
            dimension_semantics=("parallel", "parallel", "arbitrary")),
    )(cols, w_mat, bias)
    return out[:M, :n_out]


# ----------------------------------------------------------------------------
# JAX glue
# ----------------------------------------------------------------------------
def _im2col_3x3(x):
    """x: NHWC bf16, stride 1, pad 1 -> (N*H*W, 9*C) bf16."""
    n, h, w, c = x.shape
    xp = jnp.pad(x, ((0, 0), (1, 1), (1, 1), (0, 0)))
    taps = [xp[:, i:i + h, j:j + w, :] for i in range(3) for j in range(3)]
    return jnp.concatenate(taps, axis=-1).reshape(n * h * w, 9 * c)


# ----------------------------------------------------------------------------
# Parameters (deterministic synthetic weights; all layout prep done here, once)
# ----------------------------------------------------------------------------
def init_m_block_params(key, in_ch, out_ch, ratio=16):
    hidden = int(in_ch / ratio)
    assert hidden >= 1, "in_ch must be >= ratio"
    k1, k2, k3, k4, k5, k6 = jax.random.split(key, 6)

    def rn(k, shape, scale=0.05):
        return jax.random.normal(k, shape, jnp.float32) * scale

    # SE gate linears (padded hidden dim; zero pads are inert through relu).
    Hh = _round_up(hidden, 128)
    w1 = jnp.zeros((in_ch, Hh), jnp.float32).at[:, :hidden].set(
        rn(k1, (in_ch, hidden)))
    b1 = jnp.zeros((1, Hh), jnp.float32).at[:, :hidden].set(rn(k2, (1, hidden)))
    w2 = jnp.zeros((Hh, in_ch), jnp.float32).at[:hidden, :].set(
        rn(k3, (hidden, in_ch)))
    b2 = rn(k4, (1, in_ch))

    # Conv2d(in_ch, out_ch, 3, padding=1): torch layout (out, in, kh, kw)
    # -> (kh, kw, in, out) -> (9*in, out), pre-padded + cast to bf16 once.
    w_t = rn(k5, (out_ch, in_ch, 3, 3))
    b_t = rn(k6, (out_ch,))
    K = 9 * in_ch
    Kp, _, Np, _ = _conv_tiles(K, out_ch)
    w_mat = jnp.transpose(w_t, (2, 3, 1, 0)).reshape(K, out_ch)
    w_mat = jnp.pad(w_mat, ((0, Kp - K), (0, Np - out_ch))).astype(jnp.bfloat16)
    bias = jnp.pad(b_t.reshape(1, out_ch), ((0, 0), (0, Np - out_ch)))

    return {"w1": w1, "b1": b1, "w2": w2, "b2": b2,
            "w_mat": w_mat, "bias": bias}


# ----------------------------------------------------------------------------
# Forward (matches PyTorch M_block.forward, NCHW in / NCHW out)
# ----------------------------------------------------------------------------
def m_block_forward(params, x, *, out_ch):
    b, c, h, w = x.shape
    x_nhwc = jnp.transpose(x, (0, 2, 3, 1))

    # 1) squeeze: AdaptiveAvgPool2d(1) -> (B, C)   (plain XLA reduce)
    g = jnp.mean(x_nhwc, axis=(1, 2))

    # 2) excitation gate: fused Pallas kernel (linear->relu->linear->sigmoid)
    a = se_gate(g, params["w1"], params["b1"], params["w2"], params["b2"])

    # 3) channel re-weighting, folded into the bf16 cast that feeds the conv
    xs = (x_nhwc * a[:, None, None, :]).astype(jnp.bfloat16)

    # 4) 3x3 conv: bf16 im2col + Pallas MXU matmul with fused bias
    cols = _im2col_3x3(xs)
    out = conv_matmul(cols, params["w_mat"], params["bias"], out_ch)
    out = out.reshape(b, h, w, out_ch)
    return jnp.transpose(out, (0, 3, 1, 2))


# ----------------------------------------------------------------------------
if __name__ == "__main__":
    B, IN_CH, OUT_CH, H, W = 2, 64, 64, 16, 16   # ratio=16 -> hidden=4

    key = jax.random.PRNGKey(0)
    k_param, k_x = jax.random.split(key)
    params = init_m_block_params(k_param, IN_CH, OUT_CH, ratio=16)
    x = jax.random.normal(k_x, (B, IN_CH, H, W), jnp.float32)

    fwd = jax.jit(functools.partial(m_block_forward, out_ch=OUT_CH))
    out = jax.block_until_ready(fwd(params, x))

    assert out.shape == (B, OUT_CH, H, W), out.shape
    assert bool(jnp.all(jnp.isfinite(out)))
    print("KERNEL_OK")
</pallas_src>

<mosaic_0001>
module attributes {stable_mosaic.version = 11 : i64} {
  func.func @_se_gate_kernel(%arg0: i32, %arg1: memref<8x64xf32, #tpu.memory_space<vmem>>, %arg2: memref<64x128xf32, #tpu.memory_space<vmem>>, %arg3: memref<1x128xf32, #tpu.memory_space<vmem>>, %arg4: memref<128x64xf32, #tpu.memory_space<vmem>>, %arg5: memref<1x64xf32, #tpu.memory_space<vmem>>, %arg6: memref<8x64xf32, #tpu.memory_space<vmem>>) attributes {dimension_semantics = [#tpu.dimension_semantics<arbitrary>], iteration_bounds = array<i64: 1>, scalar_prefetch = 0 : i64, scratch_operands = 0 : i64, tpu.core_type = #tpu.core_type<tc>, window_params = [{pipeline_mode = #tpu.pipeline_mode<synchronous>, transform_indices = @transform_0, window_bounds = array<i64: 8, 64>}, {pipeline_mode = #tpu.pipeline_mode<synchronous>, transform_indices = @transform_1, window_bounds = array<i64: 64, 128>}, {pipeline_mode = #tpu.pipeline_mode<synchronous>, transform_indices = @transform_2, window_bounds = array<i64: 1, 128>}, {pipeline_mode = #tpu.pipeline_mode<synchronous>, transform_indices = @transform_3, window_bounds = array<i64: 128, 64>}, {pipeline_mode = #tpu.pipeline_mode<synchronous>, transform_indices = @transform_4, window_bounds = array<i64: 1, 64>}, {pipeline_mode = #tpu.pipeline_mode<synchronous>, transform_indices = @transform_5, window_bounds = array<i64: 8, 64>}]} {
    %c0 = arith.constant 0 : index
    %c0_0 = arith.constant 0 : index
    %0 = vector.load %arg1[%c0, %c0_0] : memref<8x64xf32, #tpu.memory_space<vmem>>, vector<8x64xf32>
    %c0_1 = arith.constant 0 : index
    %c0_2 = arith.constant 0 : index
    %1 = vector.load %arg2[%c0_1, %c0_2] : memref<64x128xf32, #tpu.memory_space<vmem>>, vector<64x128xf32>
    %cst = arith.constant dense<0.000000e+00> : vector<8x128xf32>
    %2 = tpu.matmul %0, %1, %cst {dimension_numbers = #tpu.dot_dimension_numbers<[1], [0], [0], [1], [0, 0, 1, 1], [], []>} : vector<8x64xf32>, vector<64x128xf32>, vector<8x128xf32> -> vector<8x128xf32>
    %c0_3 = arith.constant 0 : index
    %c0_4 = arith.constant 0 : index
    %3 = vector.load %arg3[%c0_3, %c0_4] : memref<1x128xf32, #tpu.memory_space<vmem>>, vector<1x128xf32>
    %4 = vector.broadcast %3 : vector<1x128xf32> to vector<8x128xf32>
    %5 = arith.addf %2, %4 : vector<8x128xf32>
    %cst_5 = arith.constant 0.000000e+00 : f32
    %6 = vector.broadcast %cst_5 : f32 to vector<8x128xf32>
    %7 = arith.maximumf %5, %6 : vector<8x128xf32>
    %c0_6 = arith.constant 0 : index
    %c0_7 = arith.constant 0 : index
    %8 = vector.load %arg4[%c0_6, %c0_7] : memref<128x64xf32, #tpu.memory_space<vmem>>, vector<128x64xf32>
    %cst_8 = arith.constant dense<0.000000e+00> : vector<8x64xf32>
    %9 = tpu.matmul %7, %8, %cst_8 {dimension_numbers = #tpu.dot_dimension_numbers<[1], [0], [0], [1], [0, 0, 1, 1], [], []>} : vector<8x128xf32>, vector<128x64xf32>, vector<8x64xf32> -> vector<8x64xf32>
    %c0_9 = arith.constant 0 : index
    %c0_10 = arith.constant 0 : index
    %10 = vector.load %arg5[%c0_9, %c0_10] : memref<1x64xf32, #tpu.memory_space<vmem>>, vector<1x64xf32>
    %11 = vector.broadcast %10 : vector<1x64xf32> to vector<8x64xf32>
    %12 = arith.addf %9, %11 : vector<8x64xf32>
    %13 = arith.negf %12 : vector<8x64xf32>
    %14 = math.exp %13 : vector<8x64xf32>
    %cst_11 = arith.constant 1.000000e+00 : f32
    %15 = vector.broadcast %cst_11 : f32 to vector<8x64xf32>
    %16 = arith.addf %15, %14 : vector<8x64xf32>
    %17 = arith.divf %15, %16 : vector<8x64xf32>
    %c0_12 = arith.constant 0 : index
    %c0_13 = arith.constant 0 : index
    %18 = vector.load %arg6[%c0_12, %c0_13] : memref<8x64xf32, #tpu.memory_space<vmem>>, vector<8x64xf32>
    tpu.vector_store %arg6[%c0_12, %c0_13], %17 {strides = array<i32>} : memref<8x64xf32, #tpu.memory_space<vmem>>, vector<8x64xf32>,
    return
  }
  func.func @transform_0(%arg0: i32) -> (i32, i32) {
    %c0_i32 = arith.constant 0 : i32
    %c0_i32_0 = arith.constant 0 : i32
    %c0_i32_1 = arith.constant 0 : i32
    return %c0_i32, %c0_i32_0 : i32, i32
  }
  func.func @transform_1(%arg0: i32) -> (i32, i32) {
    %c0_i32 = arith.constant 0 : i32
    %c0_i32_0 = arith.constant 0 : i32
    %c0_i32_1 = arith.constant 0 : i32
    return %c0_i32, %c0_i32_0 : i32, i32
  }
  func.func @transform_2(%arg0: i32) -> (i32, i32) {
    %c0_i32 = arith.constant 0 : i32
    %c0_i32_0 = arith.constant 0 : i32
    %c0_i32_1 = arith.constant 0 : i32
    return %c0_i32, %c0_i32_0 : i32, i32
  }
  func.func @transform_3(%arg0: i32) -> (i32, i32) {
    %c0_i32 = arith.constant 0 : i32
    %c0_i32_0 = arith.constant 0 : i32
    %c0_i32_1 = arith.constant 0 : i32
    return %c0_i32, %c0_i32_0 : i32, i32
  }
  func.func @transform_4(%arg0: i32) -> (i32, i32) {
    %c0_i32 = arith.constant 0 : i32
    %c0_i32_0 = arith.constant 0 : i32
    %c0_i32_1 = arith.constant 0 : i32
    return %c0_i32, %c0_i32_0 : i32, i32
  }
  func.func @transform_5(%arg0: i32) -> (i32, i32) {
    %c0_i32 = arith.constant 0 : i32
    %c0_i32_0 = arith.constant 0 : i32
    %c0_i32_1 = arith.constant 0 : i32
    return %c0_i32, %c0_i32_0 : i32, i32
  }
}

module attributes {stable_mosaic.version = 11 : i64} {
  func.func @_conv_mm_kernel(%arg0: i32, %arg1: i32, %arg2: i32, %arg3: memref<256x576xbf16, #tpu.memory_space<vmem>>, %arg4: memref<576x128xbf16, #tpu.memory_space<vmem>>, %arg5: memref<1x128xf32, #tpu.memory_space<vmem>>, %arg6: memref<256x128xf32, #tpu.memory_space<vmem>>) attributes {dimension_semantics = [#tpu.dimension_semantics<parallel>, #tpu.dimension_semantics<parallel>, #tpu.dimension_semantics<arbitrary>], iteration_bounds = array<i64: 2, 1, 1>, scalar_prefetch = 0 : i64, scratch_operands = 0 : i64, tpu.core_type = #tpu.core_type<tc>, window_params = [{transform_indices = @transform_0, window_bounds = array<i64: 256, 576>}, {transform_indices = @transform_1, window_bounds = array<i64: 576, 128>}, {transform_indices = @transform_2, window_bounds = array<i64: 1, 128>}, {transform_indices = @transform_3, window_bounds = array<i64: 256, 128>}]} {
    %c0 = arith.constant 0 : index
    %c0_0 = arith.constant 0 : index
    %0 = vector.load %arg3[%c0, %c0_0] : memref<256x576xbf16, #tpu.memory_space<vmem>>, vector<256x576xbf16>
    %c0_1 = arith.constant 0 : index
    %c0_2 = arith.constant 0 : index
    %1 = vector.load %arg4[%c0_1, %c0_2] : memref<576x128xbf16, #tpu.memory_space<vmem>>, vector<576x128xbf16>
    %cst = arith.constant dense<0.000000e+00> : vector<256x128xf32>
    %2 = tpu.matmul %0, %1, %cst {dimension_numbers = #tpu.dot_dimension_numbers<[1], [0], [0], [1], [0, 0, 1, 1], [], []>} : vector<256x576xbf16>, vector<576x128xbf16>, vector<256x128xf32> -> vector<256x128xf32>
    %c0_i32 = arith.constant 0 : i32
    %3 = arith.cmpi eq, %arg2, %c0_i32 : i32
    %4 = arith.extui %3 : i1 to i32
    %c0_i32_3 = arith.constant 0 : i32
    %5 = arith.cmpi ne, %4, %c0_i32_3 : i32
    scf.if %5 {
      %c0_8 = arith.constant 0 : index
      %c0_9 = arith.constant 0 : index
      %12 = vector.load %arg6[%c0_8, %c0_9] : memref<256x128xf32, #tpu.memory_space<vmem>>, vector<256x128xf32>
      tpu.vector_store %arg6[%c0_8, %c0_9], %2 {strides = array<i32>} : memref<256x128xf32, #tpu.memory_space<vmem>>, vector<256x128xf32>,
    } else {
    }
    %c0_i32_4 = arith.constant 0 : i32
    %6 = arith.cmpi sgt, %arg2, %c0_i32_4 : i32
    %7 = arith.extui %6 : i1 to i32
    %c0_i32_5 = arith.constant 0 : i32
    %8 = arith.cmpi ne, %7, %c0_i32_5 : i32
    scf.if %8 {
      %c0_8 = arith.constant 0 : index
      %c0_9 = arith.constant 0 : index
      %12 = vector.load %arg6[%c0_8, %c0_9] : memref<256x128xf32, #tpu.memory_space<vmem>>, vector<256x128xf32>
      %13 = arith.addf %12, %2 : vector<256x128xf32>
      %c0_10 = arith.constant 0 : index
      %c0_11 = arith.constant 0 : index
      %14 = vector.load %arg6[%c0_10, %c0_11] : memref<256x128xf32, #tpu.memory_space<vmem>>, vector<256x128xf32>
      tpu.vector_store %arg6[%c0_10, %c0_11], %13 {strides = array<i32>} : memref<256x128xf32, #tpu.memory_space<vmem>>, vector<256x128xf32>,
    } else {
    }
    %c0_i32_6 = arith.constant 0 : i32
    %9 = arith.cmpi eq, %arg2, %c0_i32_6 : i32
    %10 = arith.extui %9 : i1 to i32
    %c0_i32_7 = arith.constant 0 : i32
    %11 = arith.cmpi ne, %10, %c0_i32_7 : i32
    scf.if %11 {
      %c0_8 = arith.constant 0 : index
      %c0_9 = arith.constant 0 : index
      %12 = vector.load %arg6[%c0_8, %c0_9] : memref<256x128xf32, #tpu.memory_space<vmem>>, vector<256x128xf32>
      %c0_10 = arith.constant 0 : index
      %c0_11 = arith.constant 0 : index
      %13 = vector.load %arg5[%c0_10, %c0_11] : memref<1x128xf32, #tpu.memory_space<vmem>>, vector<1x128xf32>
      %14 = vector.broadcast %13 : vector<1x128xf32> to vector<256x128xf32>
      %15 = arith.addf %12, %14 : vector<256x128xf32>
      %c0_12 = arith.constant 0 : index
      %c0_13 = arith.constant 0 : index
      %16 = vector.load %arg6[%c0_12, %c0_13] : memref<256x128xf32, #tpu.memory_space<vmem>>, vector<256x128xf32>
      tpu.vector_store %arg6[%c0_12, %c0_13], %15 {strides = array<i32>} : memref<256x128xf32, #tpu.memory_space<vmem>>, vector<256x128xf32>,
    } else {
    }
    return
  }
  func.func @transform_0(%arg0: i32, %arg1: i32, %arg2: i32) -> (i32, i32) {
    %c0_i32 = arith.constant 0 : i32
    return %arg0, %arg2 : i32, i32
  }
  func.func @transform_1(%arg0: i32, %arg1: i32, %arg2: i32) -> (i32, i32) {
    %c0_i32 = arith.constant 0 : i32
    return %arg2, %arg1 : i32, i32
  }
  func.func @transform_2(%arg0: i32, %arg1: i32, %arg2: i32) -> (i32, i32) {
    %c0_i32 = arith.constant 0 : i32
    %c0_i32_0 = arith.constant 0 : i32
    return %c0_i32, %arg1 : i32, i32
  }
  func.func @transform_3(%arg0: i32, %arg1: i32, %arg2: i32) -> (i32, i32) {
    %c0_i32 = arith.constant 0 : i32
    return %arg0, %arg1 : i32, i32
  }
}

</mosaic_0001>

<bundles_post_ra>
// kernel: m_block_forward.2
= control target key start
LH: loop header
LB: loop body
LE: loop exit
PB: predicated region body
PF: predicated region fallthrough
CT: control target
= control target key end

     0   :  { %v342_v0 = vmov 0.0|0.0   ;;  %vm343_vm0 = vmmov 0   ;;  %v344_v4 = vmov 0.0   ;;  %vm36_vm1 = vcmask 523264   ;;  %s473_s1 = inlined_call_operand.vmem [shape: f32[64,128], index: 1, kind: input, shape index: {}]   ;;  %s474_s3 = inlined_call_operand.vmem [shape: f32[128,64], index: 3, kind: input, shape index: {}]   ;;  %s475_s0 = inlined_call_operand.vmem [shape: f32[8,64], index: 0, kind: input, shape index: {}]   ;;  %s476_s2 = inlined_call_operand.vmem [shape: f32[1,128], index: 2, kind: input, shape index: {}]   ;;  %s477_s4 = inlined_call_operand.vmem [shape: f32[1,64], index: 4, kind: input, shape index: {}]   ;;  %s478_s5 = inlined_call_operand.vmem [shape: f32[8,64], index: 5, kind: output, shape index: {}]  }
   0x1   :  { %299 = vmatprep.subr.bf16.mxu0 %v342_v0  ;;  %v21_v1 = vld [vmem:[%s473_s1] sm:$0xff]  ;;  %v22_v2 = vld [vmem:[%s473_s1 + $0x8] sm:$0xff]  ;;  %v23_v3 = vld [vmem:[%s473_s1 + $0x10] sm:$0xff]  ;;  %261 = vmatprep.mubr.msk.f32.mxu0 %vm343_vm0, %v344_v4 }
   0x2   :  { %v300_v5 = vpack.c.bf16 %v22_v2, %v21_v1  ;;  %v24_v6 = vld [vmem:[%s473_s1 + $0x18] sm:$0xff]  ;;  %311 = vmatprep.subr.bf16.mxu1 %v342_v0  ;;  %296 = vmatprep.mubr.msk.f32.mxu1 %vm343_vm0, %v344_v4  ;;  %v111_v8 = vld [vmem:[%s474_s3] sm:$0xff]  ;;  %v112_v9 = vld [vmem:[%s474_s3 + $0x8] sm:$0xff] }
   0x3   :  { %v303_v7 = vpack.c.bf16 %v24_v6, %v23_v3  ;;  %v113_v10 = vld [vmem:[%s474_s3 + $0x10] sm:$0xff]  ;;  %v25_v11 = vld [vmem:[%s473_s1 + $0x20] sm:$0xff]  ;;  %v26_v12 = vld [vmem:[%s473_s1 + $0x28] sm:$0xff]  ;;  %v312_v13 = vpack.c.bf16 %v112_v9, %v111_v8 }
   0x4   :  { %301 = vmatpush3.bf16.msra.mxu0 %v300_v5  ;;  %v114_v14 = vld [vmem:[%s474_s3 + $0x18] sm:$0xff]  ;;  %v306_v16 = vpack.c.bf16 %v26_v12, %v25_v11  ;;  %v115_v17 = vld [vmem:[%s474_s3 + $0x20] sm:$0xff]  ;;  %v116_v18 = vld [vmem:[%s474_s3 + $0x28] sm:$0xff] }
   0x5   :  { %302 = vmatprep.subr.bf16.mxu0 %v342_v0  ;;  %313 = vmatpush3.bf16.msra.mxu1 %v312_v13  ;;  %v315_v15 = vpack.c.bf16 %v114_v14, %v113_v10  ;;  %v27_v19 = vld [vmem:[%s473_s1 + $0x30] sm:$0xff]  ;;  %v28_v20 = vld [vmem:[%s473_s1 + $0x38] sm:$0xff]  ;;  %v318_v21 = vpack.c.bf16 %v116_v18, %v115_v17  ;;  %v20_v26 = vld [vmem:[%s475_s0] sm:$0xff] }
   0x6   :  { %314 = vmatprep.subr.bf16.mxu1 %v342_v0  ;;  %v309_v22 = vpack.c.bf16 %v28_v20, %v27_v19  ;;  %v117_v23 = vld [vmem:[%s474_s3 + $0x30] sm:$0xff]  ;;  %v118_v24 = vld [vmem:[%s474_s3 + $0x38] sm:$0xff]  ;;  %v119_v27 = vld [vmem:[%s474_s3 + $0x40] sm:$0xff] }
   0x7   :  { %v321_v25 = vpack.c.bf16 %v118_v24, %v117_v23  ;;  %v120_v28 = vld [vmem:[%s474_s3 + $0x48] sm:$0xff]  ;;  %v121_v30 = vld [vmem:[%s474_s3 + $0x50] sm:$0xff]  ;;  %v122_v31 = vld [vmem:[%s474_s3 + $0x58] sm:$0xff] }
   0x8   :  { %304 = vmatpush3.bf16.msra.mxu0 %v303_v7  ;;  %v324_v29 = vpack.c.bf16 %v120_v28, %v119_v27  ;;  %v327_v32 = vpack.c.bf16 %v122_v31, %v121_v30  ;;  %v123_v33 = vld [vmem:[%s474_s3 + $0x60] sm:$0xff]  ;;  %v124_v34 = vld [vmem:[%s474_s3 + $0x68] sm:$0xff]  ;;  %v125_v36 = vld [vmem:[%s474_s3 + $0x70] sm:$0xff] }
   0x9   :  { %305 = vmatprep.subr.bf16.mxu0 %v342_v0  ;;  %316 = vmatpush3.bf16.msra.mxu1 %v315_v15  ;;  %v330_v35 = vpack.c.bf16 %v124_v34, %v123_v33  ;;  %v126_v37 = vld [vmem:[%s474_s3 + $0x78] sm:$0xff]  ;;  %v215_v39 = vld [vmem:[%s476_s2] ss:$0 sm:$0xff] }
   0xa   :  { %317 = vmatprep.subr.bf16.mxu1 %v342_v0  ;;  %v333_v38 = vpack.c.bf16 %v126_v37, %v125_v36  ;;  %v217_v44 = vld [vmem:[%s477_s4] ss:$0 sm:$0xff] }
   0xc   :  { %307 = vmatpush3.bf16.msra.mxu0 %v306_v16 }
   0xd   :  { %308 = vmatprep.subr.bf16.mxu0 %v342_v0  ;;  %319 = vmatpush3.bf16.msra.mxu1 %v318_v21 }
   0xe   :  { %320 = vmatprep.subr.bf16.mxu1 %v342_v0 }
  0x10   :  { %310 = vmatpush3.bf16.msra.mxu0 %v309_v22 }
  0x11   :  { %322 = vmatpush3.bf16.msra.mxu1 %v321_v25 }
  0x12   :  { %323 = vmatprep.subr.bf16.mxu1 %v342_v0 }
  0x13   :  { %262 = vmatmul.mubr.msk.f32.vlgmr.msra.gmra.mrb[0].mxu0 %vm36_vm1, %v20_v26 }
  0x15   :  { %325 = vmatpush3.bf16.msra.mxu1 %v324_v29 }
  0x16   :  { %326 = vmatprep.subr.bf16.mxu1 %v342_v0 }
  0x19   :  { %328 = vmatpush3.bf16.msra.mxu1 %v327_v32 }
  0x1a   :  { %329 = vmatprep.subr.bf16.mxu1 %v342_v0 }
  0x1d   :  { %331 = vmatpush3.bf16.msra.mxu1 %v330_v35 }
  0x1e   :  { %332 = vmatprep.subr.bf16.mxu1 %v342_v0 }
  0x21   :  { %334 = vmatpush3.bf16.msra.mxu1 %v333_v38 }
  0xe6   :  { %v106_v40 = vpop.f32.mrb[0].mxu0 }
  0xe7   :  { %v107_v41 = vadd.f32 %v215_v39, %v106_v40  ;;  %v263_v42 = vpop.f32.mrb[1].mxu0 }
  0xe9   :  { %v110_v43 = vmax.f32 %v107_v41, 0.0 }
  0xeb   :  { %297 = vmatmul.mubr.f32.vlgmr.msra.gmra.mrb[0].mxu1 %v110_v43 }
 0x1be   :  { %v200_v45 = vpop.f32.mrb[0].mxu1 }
 0x1bf   :  { %v201_v46 = vadd.f32 %v217_v44, %v200_v45  ;;  %v298_v47 = vpop.f32.mrb[1].mxu1 }
 0x1c1   :  { %v218_v48 = vmul.f32 -1.442695, %v201_v46 }
 0x1c3   :  { %338 = vpow2.f32 %v218_v48 }
 0x1cd   :  { %v339_v49 = vpop.eup %338 }
 0x1ce   :  { %v207_v50 = vadd.f32 1.0, %v339_v49 }
 0x1d0   :  { %340 = vrcp.f32 %v207_v50 }
 0x1da   :  { %v341_v51 = vpop.eup %340 }
 0x1db   :  { %210 = vst.msk [vmem:[%s478_s5] sm:$0xff] %vm36_vm1, %v341_v51 }

// kernel: m_block_forward.3
= control target key start
LH: loop header
LB: loop body
LE: loop exit
PB: predicated region body
PF: predicated region fallthrough
CT: control target
= control target key end

     0   :  { %8 = vsyncpa [#allocation3], 0  ;;  %s3206_s0 = inlined_call_operand.vmem [shape: bf16[512,576], index: 0, kind: input, shape index: {}]   ;;  %s3207_s1 = inlined_call_operand.vmem [shape: bf16[576,128], index: 1, kind: input, shape index: {}]   ;;  %s3208_s2 = inlined_call_operand.vmem [shape: f32[1,128], index: 2, kind: input, shape index: {}]   ;;  %s3209_s3 = inlined_call_operand.hbm [shape: f32[512,128], index: 3, kind: output, shape index: {}]  }
   0x1   :  { %10 = vsyncpa [#allocation3 + $0x1], 0  ;;  %s2702_s12 = smov 0   ;;  %s2704_s13 = smov 0  }
   0x2   :  { %s2706_s14 = smov 0   ;;  %s2708_s15 = smov 0  }
   0x3   :  { %s2710_s16 = smov 0   ;;  %s2712_s17 = smov 0  }
   0x4 LB: > { %s1944_s18 = sadd.s32 4294967295, %s2677_s17   ;;  %s1945_s19 = sadd.s32 4294967294, %s2677_s17   ;;  %s2677_s17 = sphi %s2712_s17, %s16_s17   ;;  %s2673_s16 = sphi %s2710_s16, %s3216_s16   ;;  %s2669_s15 = sphi %s2708_s15, %s3215_s15   ;;  %s2665_s14 = sphi %s2706_s14, %s3214_s14   ;;  %s2661_s13 = sphi %s2704_s13, %s3213_s13   ;;  %s2657_s12 = sphi %s2702_s12, %s3212_s12  }
   0x5   : > { %s35_s20 = sadd.s32 1, %s2673_s16  ;;  %s126_s21 = sadd.s32 1, %s2665_s14 }
   0x6   : > { %p37_p0 = scmp.ge.s32.totalorder %s35_s20, 2  ;;  %p136_p1 = scmp.ne.s32.totalorder %s2665_s14, %s2661_s13 }
   0x7   : > { %p137_p2 = scmp.eq.s32.totalorder %s1944_s18, 1  ;;  %p142_p3 = scmp.ne.s32.totalorder %s2661_s13, %s2657_s12 }
   0x8   : > { %s3218_s20 = smov (%p37_p0, %s35_s20), 0  ;;  %p143_p5 = scmp.eq.s32.totalorder %s1945_s19, 1 }
   0x9   : > { %p2742_p4 = por %p137_p2, %p136_p1  ;;  %s121_s23 = ssub.s32 %s2673_s16, %s3218_s20 }
   0xa   : > { %p1950_p6 = scmp.ge.s32.totalorder %s2677_s17, 1  ;;  %p124_p7 = scmp.eq.s32.totalorder %s121_s23, 0 }
   0xb   : > { %p2749_p8 = por %p143_p5, %p142_p3  ;;  %p194_p9 = scmp.lt.s32.totalorder %s2677_s17, 3 }
   0xc   : > { %s2755_s25 = scalar_select %p124_p7, %s2665_s14, %s126_s21  }
   0xd   : > { %p195_p10 = pnand %p1950_p6, %p194_p9 }
   0xe   : > { %v2451_v0 = vld [vmem:[%s3207_s1 + $0x40] sm:$0xff] (!%p195_p10)   ;;  %s1952_s28 = sshll.u32 (!%p195_p10), %s2669_s15, 5  ;;  %v2453_v2 = vld [vmem:[%s3207_s1 + $0x48] sm:$0xff] (!%p195_p10)   ;;  %v2455_v4 = vld [vmem:[%s3207_s1 + $0x50] sm:$0xff] (!%p195_p10)   ;;  %vm1044_vm0 = vcmask (!%p195_p10), 523264   ;;  %s2092_s23 = sshll.u32 (!%p195_p10), %s2669_s15, 12 }
   0xf   : > { %198 = sbr.rel (%p195_p10) target bundleno = 437 (0x1b5), region = 32  ;;  %v2452_v1 = vld [vmem:[%s3207_s1] sm:$0xff] (!%p195_p10)   ;;  %2093 = vmatprep.subr.bf16.mxu0 (!%p195_p10), %v2451_v0  ;;  %2377 = vmatprep.subr.bf16.mxu1 (!%p195_p10), %v2451_v0  ;;  %p236_p11 = scmp.lt.s32.totalorder (!%p195_p10), %s1952_s28, 63  ;;  %v2454_v3 = vld [vmem:[%s3207_s1 + $0x8] sm:$0xff] (!%p195_p10)   ;;  %v2456_v5 = vld [vmem:[%s3207_s1 + $0x10] sm:$0xff] (!%p195_p10)  }
  0x10   : > { %2094 = vmatpush3.bf16.msra.mxu0 (!%p195_p10), %v2452_v1  ;;  %2385 = vmatpush3.bf16.msra.mxu1 (!%p195_p10), %v2452_v1  ;;  %v2457_v6 = vld [vmem:[%s3207_s1 + $0x58] sm:$0xff] (!%p195_p10)   ;;  %v2459_v8 = vld [vmem:[%s3207_s1 + $0x60] sm:$0xff] (!%p195_p10)   ;;  %v2461_v10 = vld [vmem:[%s3207_s1 + $0x68] sm:$0xff] (!%p195_p10)   ;;  %s3151_s30 = scalar_lea.hbm (!%p195_p10), %s3209_s3, %s2092_s23 }
  0x11   : > { %2095 = vmatprep.subr.bf16.mxu0 (!%p195_p10), %v2453_v2  ;;  %2378 = vmatprep.subr.bf16.mxu1 (!%p195_p10), %v2453_v2  ;;  %v2458_v7 = vld [vmem:[%s3207_s1 + $0x18] sm:$0xff] (!%p195_p10)   ;;  %v2460_v9 = vld [vmem:[%s3207_s1 + $0x20] sm:$0xff] (!%p195_p10)   ;;  %v2462_v13 = vld [vmem:[%s3207_s1 + $0x28] sm:$0xff] (!%p195_p10)  }
  0x12   : > { %v2463_v14 = vld [vmem:[%s3207_s1 + $0x70] sm:$0xff] (!%p195_p10)   ;;  %v2465_v16 = vld [vmem:[%s3207_s1 + $0x78] sm:$0xff] (!%p195_p10)   ;;  %v2473_v18 = vld [vmem:[%s3207_s1 + $0xc0] sm:$0xff] (!%p195_p10)  }
  0x13   : > { %v2464_v15 = vld [vmem:[%s3207_s1 + $0x30] sm:$0xff] (!%p195_p10)   ;;  %v2466_v17 = vld [vmem:[%s3207_s1 + $0x38] sm:$0xff] (!%p195_p10)   ;;  %v2476_v19 = vld [vmem:[%s3207_s1 + $0x100] sm:$0xff] (!%p195_p10)  }
  0x14   : > { %2096 = vmatpush3.bf16.msra.mxu0 (!%p195_p10), %v2454_v3  ;;  %2386 = vmatpush3.bf16.msra.mxu1 (!%p195_p10), %v2454_v3  ;;  %v2474_v22 = vld [vmem:[%s3207_s1 + $0x80] sm:$0xff] (!%p195_p10)   ;;  %v2475_v23 = vld [vmem:[%s3207_s1 + $0xc8] sm:$0xff] (!%p195_p10)   ;;  %v2484_v28 = vld [vmem:[%s3207_s1 + $0xd0] sm:$0xff] (!%p195_p10)  }
  0x15   : > { %2097 = vmatprep.subr.bf16.mxu0 (!%p195_p10), %v2455_v4  ;;  %2379 = vmatprep.subr.bf16.mxu1 (!%p195_p10), %v2455_v4  ;;  %v2477_v26 = vld [vmem:[%s3207_s1 + $0x88] sm:$0xff] (!%p195_p10)   ;;  %v2485_v30 = vld [vmem:[%s3207_s1 + $0x90] sm:$0xff] (!%p195_p10)   ;;  %v2486_v31 = vld [vmem:[%s3207_s1 + $0xd8] sm:$0xff] (!%p195_p10)  }
  0x16   : > { %s3220_s28 = smov (!%p236_p11, %s1952_s28), 63  ;;  %v2487_v34 = vld [vmem:[%s3207_s1 + $0x98] sm:$0xff]   ;;  %v2507_v35 = vld [vmem:[%s3207_s1 + $0x108] sm:$0xff]   ;;  %v2494_v37 = vld [vmem:[%s3207_s1 + $0xe0] sm:$0xff]  }
  0x17   : > { %s2393_s21 = smul.u32 20, %s3220_s28  ;;  %v2495_v39 = vld [vmem:[%s3207_s1 + $0xa0] sm:$0xff]   ;;  %v2496_v40 = vld [vmem:[%s3207_s1 + $0xe8] sm:$0xff]   ;;  %v2504_v46 = vld [vmem:[%s3207_s1 + $0xf0] sm:$0xff]   ;;  %s2679_s28 = smov [#allocation2]  }
  0x18   : > { %2098 = vmatpush3.bf16.msra.mxu0 %v2456_v5  ;;  %2387 = vmatpush3.bf16.msra.mxu1 %v2456_v5  ;;  %v2497_v43 = vld [vmem:[%s3207_s1 + $0xa8] sm:$0xff]   ;;  %v2527_v47 = vld [vmem:[%s3207_s1 + $0x110] sm:$0xff]   ;;  %v2506_v49 = vld [vmem:[%s3207_s1 + $0xf8] sm:$0xff]   ;;  %s2603_s6 = sshll.u32 %s2679_s28, 4  ;;  %s2604_s6 = int_to_ptr.vmem [resolvable:$false] %s2603_s6 }
  0x19   : > { %2099 = vmatprep.subr.bf16.mxu0 %v2457_v6  ;;  %2380 = vmatprep.subr.bf16.mxu1 %v2457_v6  ;;  %s2788_s5 = scalar_lea.vmem %s3206_s0, %s2393_s21  ;;  %v2505_v48 = vld [vmem:[%s3207_s1 + $0xb0] sm:$0xff]   ;;  %v2508_v52 = vld [vmem:[%s3207_s1 + $0xb8] sm:$0xff]   ;;  %s2605_s7 = scalar_lea.vmem %s2604_s6, 8192 }
  0x1a   : > { %v2469_v11 = vld [vmem:[%s2788_s5 + $0x4] ss:$20 sps:$4 sm:$0xff]   ;;  %v2467_v20 = vld [vmem:[%s2788_s5] ss:$20 sps:$4 sm:$0xff]   ;;  %v2482_v27 = vld [vmem:[%s2788_s5 + $0x28] ss:$20 sps:$4 sm:$0xff]  }
  0x1b   : > { %v2472_v12 = vld [vmem:[%s2788_s5 + $0x1e4] ss:$20 sps:$4 sm:$0xff]   ;;  %1125 = vmatprep.mubr.bf16.mxu0 %v2469_v11  ;;  %v2470_v21 = vld [vmem:[%s2788_s5 + $0x1e0] ss:$20 sps:$4 sm:$0xff]   ;;  %v2483_v29 = vld [vmem:[%s2788_s5 + $0x208] ss:$20 sps:$4 sm:$0xff]  }
  0x1c   : > { %2100 = vmatpush3.bf16.msra.mxu0 %v2458_v7  ;;  %2388 = vmatpush3.bf16.msra.mxu1 %v2458_v7  ;;  %v2478_v24 = vld [vmem:[%s2788_s5 + $0x2c] ss:$20 sps:$4 sm:$0xff]   ;;  %v2488_v32 = vld [vmem:[%s2788_s5 + $0x54] ss:$20 sps:$4 sm:$0xff]   ;;  %v2492_v36 = vld [vmem:[%s2788_s5 + $0x50] ss:$20 sps:$4 sm:$0xff]  }
  0x1d   : > { %2101 = vmatprep.subr.bf16.mxu0 %v2459_v8  ;;  %2381 = vmatprep.subr.bf16.mxu1 %v2459_v8  ;;  %v2480_v25 = vld [vmem:[%s2788_s5 + $0x20c] ss:$20 sps:$4 sm:$0xff]   ;;  %v2490_v33 = vld [vmem:[%s2788_s5 + $0x234] ss:$20 sps:$4 sm:$0xff]   ;;  %v2493_v38 = vld [vmem:[%s2788_s5 + $0x230] ss:$20 sps:$4 sm:$0xff]  }
  0x1e   : > { %1221 = vmatprep.mubr.bf16.mxu1 %v2472_v12  ;;  %v2498_v41 = vld [vmem:[%s2788_s5 + $0x7c] ss:$20 sps:$4 sm:$0xff]   ;;  %v2502_v44 = vld [vmem:[%s2788_s5 + $0x78] ss:$20 sps:$4 sm:$0xff]   ;;  %v2514_v54 = vld [vmem:[%s2788_s5 + $0xa0] ss:$20 sps:$4 sm:$0xff]  }
  0x1f   : > { %v2500_v42 = vld [vmem:[%s2788_s5 + $0x25c] ss:$20 sps:$4 sm:$0xff]   ;;  %v2503_v45 = vld [vmem:[%s2788_s5 + $0x258] ss:$20 sps:$4 sm:$0xff]   ;;  %v2517_v57 = vld [vmem:[%s2788_s5 + $0x34] ss:$20 sps:$4 sm:$0xff]  }
  0x20   : > { %2102 = vmatpush3.bf16.msra.mxu0 %v2460_v9  ;;  %2389 = vmatpush3.bf16.msra.mxu1 %v2460_v9  ;;  %v2509_v50 = vld [vmem:[%s2788_s5 + $0xa4] ss:$20 sps:$4 sm:$0xff]   ;;  %v2513_v51 = vld [vmem:[%s2788_s5 + $0xc] ss:$20 sps:$4 sm:$0xff]   ;;  %v2511_v53 = vld [vmem:[%s2788_s5 + $0x8] ss:$20 sps:$4 sm:$0xff]  }
  0x21   : > { %2103 = vmatprep.subr.bf16.mxu0 %v2461_v10  ;;  %2382 = vmatprep.subr.bf16.mxu1 %v2461_v10  ;;  %v2515_v55 = vld [vmem:[%s2788_s5 + $0xcc] ss:$20 sps:$4 sm:$0xff]   ;;  %v2546_v56 = vld [vmem:[%s3207_s1 + $0x118] sm:$0xff]   ;;  %v2520_v59 = vld [vmem:[%s2788_s5 + $0x30] ss:$20 sps:$4 sm:$0xff]  }
  0x22   : > { %v2519_v58 = vld [vmem:[%s2788_s5 + $0xc8] ss:$20 sps:$4 sm:$0xff]   ;;  %v2525_v62 = vld [vmem:[%s2788_s5 + $0xf0] ss:$20 sps:$4 sm:$0xff]   ;;  %v2526_v63 = vld [vmem:[%s2788_s5 + $0x58] ss:$20 sps:$4 sm:$0xff]  }
  0x23   : > { %v2521_v60 = vld [vmem:[%s2788_s5 + $0xf4] ss:$20 sps:$4 sm:$0xff]   ;;  %v2523_v61 = vld [vmem:[%s2788_s5 + $0x5c] ss:$20 sps:$4 sm:$0xff]   ;;  %v2530_v1 = vld [vmem:[%s2788_s5 + $0x84] ss:$20 sps:$4 sm:$0xff]  }
  0x24   : > { %2104 = vmatpush3.bf16.msra.mxu0 %v2462_v13  ;;  %2390 = vmatpush3.bf16.msra.mxu1 %v2462_v13  ;;  %v2528_v0 = vld [vmem:[%s2788_s5 + $0x11c] ss:$20 sps:$4 sm:$0xff]   ;;  %v2532_v2 = vld [vmem:[%s2788_s5 + $0x118] ss:$20 sps:$4 sm:$0xff]   ;;  %v2533_v3 = vld [vmem:[%s2788_s5 + $0x80] ss:$20 sps:$4 sm:$0xff]  }
  0x25   : > { %2105 = vmatprep.subr.bf16.mxu0 %v2463_v14  ;;  %2383 = vmatprep.subr.bf16.mxu1 %v2463_v14  ;;  %v2534_v4 = vld [vmem:[%s2788_s5 + $0x144] ss:$20 sps:$4 sm:$0xff]   ;;  %v2536_v5 = vld [vmem:[%s2788_s5 + $0xac] ss:$20 sps:$4 sm:$0xff]   ;;  %v2539_v7 = vld [vmem:[%s2788_s5 + $0xa8] ss:$20 sps:$4 sm:$0xff]  }
  0x26   : > { %v2538_v6 = vld [vmem:[%s2788_s5 + $0x140] ss:$20 sps:$4 sm:$0xff]   ;;  %v2544_v10 = vld [vmem:[%s2788_s5 + $0x168] ss:$20 sps:$4 sm:$0xff]   ;;  %v2545_v11 = vld [vmem:[%s2788_s5 + $0xd0] ss:$20 sps:$4 sm:$0xff]  }
  0x27   : > { %v2540_v8 = vld [vmem:[%s2788_s5 + $0x16c] ss:$20 sps:$4 sm:$0xff]   ;;  %v2542_v9 = vld [vmem:[%s2788_s5 + $0xd4] ss:$20 sps:$4 sm:$0xff]   ;;  %v2549_v13 = vld [vmem:[%s2788_s5 + $0xfc] ss:$20 sps:$4 sm:$0xff]  }
  0x28   : > { %2106 = vmatpush3.bf16.msra.mxu0 %v2464_v15  ;;  %2391 = vmatpush3.bf16.msra.mxu1 %v2464_v15  ;;  %v2547_v12 = vld [vmem:[%s2788_s5 + $0x194] ss:$20 sps:$4 sm:$0xff]   ;;  %v2551_v14 = vld [vmem:[%s2788_s5 + $0x190] ss:$20 sps:$4 sm:$0xff]   ;;  %v2552_v15 = vld [vmem:[%s2788_s5 + $0xf8] ss:$20 sps:$4 sm:$0xff]  }
  0x29   : > { %2107 = vmatprep.subr.bf16.mxu0 %v2465_v16  ;;  %2384 = vmatprep.subr.bf16.mxu1 %v2465_v16  ;;  %v2553_v16 = vld [vmem:[%s2788_s5 + $0x1bc] ss:$20 sps:$4 sm:$0xff]  }
  0x2c   : > { %2108 = vmatpush3.bf16.msra.mxu0 %v2466_v17  ;;  %2392 = vmatpush3.bf16.msra.mxu1 %v2466_v17  ;;  %v2555_v17 = vld [vmem:[%s2788_s5 + $0x124] ss:$20 sps:$4 sm:$0xff]  }
  0x2d   : > { %2205 = vmatprep.subr.bf16.mxu1 %v2473_v18  ;;  %2337 = vmatprep.subr.bf16.mxu0 %v2476_v19  ;;  %v2557_v18 = vld [vmem:[%s2788_s5 + $0x1b8] ss:$20 sps:$4 sm:$0xff]  }
  0x2f   : > { %1126 = vmatmul.mubr.bf16.vlgmr.msra.gmra.mrb[0].mxu0 %v2467_v20  ;;  %1222 = vmatmul.mubr.bf16.vlgmr.msra.gmra.mrb[0].mxu1 %v2470_v21  ;;  %v2559_v20 = vld [vmem:[%s2788_s5 + $0x14c] ss:$20 sps:$4 sm:$0xff]   ;;  %v2561_v21 = vld [vmem:[%s2788_s5 + $0x10] ss:$20 sps:$4 sm:$0xff]  }
  0x30   : > { %2206 = vmatpush3.bf16.msra.mxu1 %v2474_v22  ;;  %2338 = vmatpush3.bf16.msra.mxu0 %v2476_v19  ;;  %v2558_v19 = vld [vmem:[%s2788_s5 + $0x120] ss:$20 sps:$4 sm:$0xff]   ;;  %v2562_v22 = vld [vmem:[%s2788_s5 + $0x148] ss:$20 sps:$4 sm:$0xff]  }
  0x31   : > { %2207 = vmatprep.subr.bf16.mxu1 %v2475_v23  ;;  %1133 = vmatprep.mubr.bf16.mxu0 %v2478_v24  ;;  %v2563_v23 = vld [vmem:[%s2788_s5 + $0x38] ss:$20 sps:$4 sm:$0xff]   ;;  %v2564_v24 = vld [vmem:[%s2788_s5 + $0x174] ss:$20 sps:$4 sm:$0xff]  }
  0x32   : > { %1229 = vmatprep.mubr.bf16.mxu1 %v2480_v25  ;;  %2339 = vmatprep.subr.bf16.mxu0 %v2507_v35  ;;  %v2566_v25 = vld [vmem:[%s2788_s5 + $0x60] ss:$20 sps:$4 sm:$0xff]  }
  0x34   : > { %2208 = vmatpush3.bf16.msra.mxu1 %v2477_v26  ;;  %2340 = vmatpush3.bf16.msra.mxu0 %v2507_v35  ;;  %v2567_v26 = vld [vmem:[%s2788_s5 + $0x170] ss:$20 sps:$4 sm:$0xff]   ;;  %v2578_v35 = vld [vmem:[%s2788_s5 + $0x128] ss:$20 sps:$4 sm:$0xff]  }
  0x35   : > { %2209 = vmatprep.subr.bf16.mxu1 %v2484_v28  ;;  %2341 = vmatprep.subr.bf16.mxu0 %v2527_v47  ;;  %v2569_v28 = vld [vmem:[%s2788_s5 + $0x19c] ss:$20 sps:$4 sm:$0xff]  }
  0x37   : > { %1134 = vmatmul.mubr.bf16.gmra.mrb[4].mxu0 %v2482_v27  ;;  %1230 = vmatmul.mubr.bf16.gmra.mrb[4].mxu1 %v2483_v29  ;;  %v2568_v27 = vld [vmem:[%s2788_s5 + $0x88] ss:$20 sps:$4 sm:$0xff]   ;;  %v2571_v29 = vld [vmem:[%s2788_s5 + $0xb0] ss:$20 sps:$4 sm:$0xff]  }
  0x38   : > { %2210 = vmatpush3.bf16.msra.mxu1 %v2485_v30  ;;  %1141 = vmatprep.mubr.bf16.mxu0 %v2488_v32  ;;  %v2572_v30 = vld [vmem:[%s2788_s5 + $0x198] ss:$20 sps:$4 sm:$0xff]  }
  0x39   : > { %2211 = vmatprep.subr.bf16.mxu1 %v2486_v31  ;;  %1237 = vmatprep.mubr.bf16.mxu1 %v2490_v33  ;;  %v2573_v31 = vld [vmem:[%s2788_s5 + $0xd8] ss:$20 sps:$4 sm:$0xff]   ;;  %v2576_v33 = vld [vmem:[%s2788_s5 + $0x100] ss:$20 sps:$4 sm:$0xff]  }
  0x3a   : > { %2342 = vmatpush3.bf16.msra.mxu0 %v2527_v47  ;;  %v2574_v32 = vld [vmem:[%s2788_s5 + $0x1c4] ss:$20 sps:$4 sm:$0xff]  }
  0x3b   : > { %2343 = vmatprep.subr.bf16.mxu0 %v2546_v56  ;;  %v2593_v47 = vld [vmem:[%s2788_s5 + $0x218] ss:$20 sps:$4 sm:$0xff]  }
  0x3c   : > { %2212 = vmatpush3.bf16.msra.mxu1 %v2487_v34  ;;  %v2577_v34 = vld [vmem:[%s2788_s5 + $0x1c0] ss:$20 sps:$4 sm:$0xff]  }
  0x3d   : > { %2213 = vmatprep.subr.bf16.mxu1 %v2494_v37  ;;  %v2581_v37 = vld [vmem:[%s2788_s5 + $0x150] ss:$20 sps:$4 sm:$0xff]  }
  0x3e   : > { %2344 = vmatpush3.bf16.msra.mxu0 %v2546_v56 }
  0x3f   : > { %1142 = vmatmul.mubr.bf16.gmra.mrb[8].mxu0 %v2492_v36  ;;  %1238 = vmatmul.mubr.bf16.gmra.mrb[8].mxu1 %v2493_v38  ;;  %v2579_v36 = vld [vmem:[%s2788_s5 + $0x1ec] ss:$20 sps:$4 sm:$0xff]   ;;  %v2582_v38 = vld [vmem:[%s2788_s5 + $0x1e8] ss:$20 sps:$4 sm:$0xff]  }
  0x40   : > { %2214 = vmatpush3.bf16.msra.mxu1 %v2495_v39  ;;  %1149 = vmatprep.mubr.bf16.mxu0 %v2498_v41  ;;  %v2583_v39 = vld [vmem:[%s2788_s5 + $0x178] ss:$20 sps:$4 sm:$0xff]   ;;  %v2586_v41 = vld [vmem:[%s2788_s5 + $0x1a0] ss:$20 sps:$4 sm:$0xff]  }
  0x41   : > { %2215 = vmatprep.subr.bf16.mxu1 %v2496_v40  ;;  %1245 = vmatprep.mubr.bf16.mxu1 %v2500_v42  ;;  %v2584_v40 = vld [vmem:[%s2788_s5 + $0x214] ss:$20 sps:$4 sm:$0xff]   ;;  %v2587_v42 = vld [vmem:[%s2788_s5 + $0x210] ss:$20 sps:$4 sm:$0xff]  }
  0x44   : > { %2216 = vmatpush3.bf16.msra.mxu1 %v2497_v43  ;;  %v2588_v43 = vld [vmem:[%s2788_s5 + $0x1c8] ss:$20 sps:$4 sm:$0xff]  }
  0x45   : > { %2217 = vmatprep.subr.bf16.mxu1 %v2504_v46  ;;  %v2592_v46 = vld [vmem:[%s2788_s5 + $0x238] ss:$20 sps:$4 sm:$0xff]  }
  0x47   : > { %1150 = vmatmul.mubr.bf16.gmra.mrb[12].mxu0 %v2502_v44  ;;  %1246 = vmatmul.mubr.bf16.gmra.mrb[12].mxu1 %v2503_v45  ;;  %v2589_v44 = vld [vmem:[%s2788_s5 + $0x23c] ss:$20 sps:$4 sm:$0xff]  }
  0x48   : > { %2218 = vmatpush3.bf16.msra.mxu1 %v2505_v48  ;;  %1157 = vmatprep.mubr.bf16.mxu0 %v2509_v50  ;;  %v2591_v45 = vld [vmem:[%s2788_s5 + $0x1f0] ss:$20 sps:$4 sm:$0xff]   ;;  %v2597_v50 = vld [vmem:[%s2788_s5 + $0x260] ss:$20 sps:$4 sm:$0xff]  }
  0x49   : > { %2219 = vmatprep.subr.bf16.mxu1 %v2506_v49  ;;  %1286 = vmatprep.mubr.bf16.mxu1 %v2513_v51  ;;  %v2594_v48 = vld [vmem:[%s2788_s5 + $0x264] ss:$20 sps:$4 sm:$0xff]   ;;  %v2596_v49 = vld [vmem:[%s2788_s5 + $0x240] ss:$20 sps:$4 sm:$0xff]   ;;  %v2598_v51 = vld [vmem:[%s2788_s5 + $0x268] ss:$20 sps:$4 sm:$0xff]  }
  0x4a   : > { %s231_s5 = sand.u32 1, %s2661_s13  }
  0x4b   : > { %s1951_s11 = sshll.u32 %s231_s5, 8  ;;  %s3160_s15 = scalar_lea.sflag [#allocation3], %s231_s5 }
  0x4c   : > { %2220 = vmatpush3.bf16.msra.mxu1 %v2508_v52  ;;  %s3051_s21 = scalar_lea.vmem [#allocation2], %s1951_s11 }
  0x4d   : > { %s1833_s26 = sshll.u32 %s3051_s21, 4  ;;  %s3153_s26 = int_to_ptr.vmem [resolvable:$true] %s1833_s26 }
  0x4e   : > { %s2599_s4 = scalar_lea.vmem %s3153_s26, 4096  ;;  %p2606_p1 = scmp.lt.s32.totalorder %s3153_s26, %s2604_s6 }
  0x4f   : > { %1158 = vmatmul.mubr.bf16.gmra.mrb[16].mxu0 %v2514_v54  ;;  %1287 = vmatmul.mubr.bf16.vlgmr.msra.gmra.mrb[16].mxu1 %v2511_v53  ;;  %p2600_p12 = scmp.ne.s32.totalorder %s3153_s26, %s2599_s4  ;;  %p2607_p2 = scmp.lt.s32.totalorder %s2605_s7, %s2599_s4 }
  0x50   : > { %1165 = vmatprep.mubr.bf16.mxu0 %v2515_v55  ;;  %1294 = vmatprep.mubr.bf16.mxu1 %v2517_v57 }
  0x51   : > { %p2601_p13 = pnand %p2600_p12, %p2742_p4  ;;  %p2608_p3 = por %p2607_p2, %p2606_p1 }
  0x53   : > { %p2602_p0 = pneg %p2601_p13 }
  0x55   : > { %p2609_p5 = pnand %p2608_p3, %p2602_p0 }
  0x57   : > { %1166 = vmatmul.mubr.bf16.gmra.mrb[20].mxu0 %v2519_v58  ;;  %1295 = vmatmul.mubr.bf16.gmra.mrb[20].mxu1 %v2520_v59 }
  0x58   : > { %1173 = vmatprep.mubr.bf16.mxu0 %v2521_v60  ;;  %1302 = vmatprep.mubr.bf16.mxu1 %v2523_v61 }
  0x5f   : > { %1174 = vmatmul.mubr.bf16.gmra.mrb[24].mxu0 %v2525_v62  ;;  %1303 = vmatmul.mubr.bf16.gmra.mrb[24].mxu1 %v2526_v63 }
  0x60   : > { %1181 = vmatprep.mubr.bf16.mxu0 %v2528_v0  ;;  %1310 = vmatprep.mubr.bf16.mxu1 %v2530_v1 }
  0x67   : > { %1182 = vmatmul.mubr.bf16.gmra.mrb[28].mxu0 %v2532_v2  ;;  %1311 = vmatmul.mubr.bf16.gmra.mrb[28].mxu1 %v2533_v3 }
  0x68   : > { %1189 = vmatprep.mubr.bf16.mxu0 %v2534_v4  ;;  %1318 = vmatprep.mubr.bf16.mxu1 %v2536_v5 }
  0x6f   : > { %1190 = vmatmul.mubr.bf16.gmra.mrb[32].mxu0 %v2538_v6  ;;  %1319 = vmatmul.mubr.bf16.gmra.mrb[32].mxu1 %v2539_v7 }
  0x70   : > { %1197 = vmatprep.mubr.bf16.mxu0 %v2540_v8  ;;  %1326 = vmatprep.mubr.bf16.mxu1 %v2542_v9 }
  0x77   : > { %1198 = vmatmul.mubr.bf16.gmra.mrb[36].mxu0 %v2544_v10  ;;  %1327 = vmatmul.mubr.bf16.gmra.mrb[36].mxu1 %v2545_v11 }
  0x78   : > { %1205 = vmatprep.mubr.bf16.mxu0 %v2547_v12  ;;  %1334 = vmatprep.mubr.bf16.mxu1 %v2549_v13 }
  0x7f   : > { %1206 = vmatmul.mubr.bf16.gmra.mrb[40].mxu0 %v2551_v14  ;;  %1335 = vmatmul.mubr.bf16.gmra.mrb[40].mxu1 %v2552_v15 }
  0x80   : > { %1213 = vmatprep.mubr.bf16.mxu0 %v2553_v16  ;;  %1342 = vmatprep.mubr.bf16.mxu1 %v2555_v17 }
  0x87   : > { %1214 = vmatmul.mubr.bf16.gmra.mrb[44].mxu0 %v2557_v18  ;;  %1343 = vmatmul.mubr.bf16.gmra.mrb[44].mxu1 %v2558_v19 }
  0x88   : > { %1350 = vmatprep.mubr.bf16.mxu1 %v2559_v20  ;;  %2345 = vmatprep.mubr.msk.bf16.mxu0 %vm1044_vm0, %v2561_v21 }
  0x8f   : > { %1351 = vmatmul.mubr.bf16.gmra.mrb[48].mxu1 %v2562_v22  ;;  %2346 = vmatmul.mubr.msk.bf16.vlgmr.msra.gmra.mrb[48].mxu0 %vm1044_vm0, %v2563_v23 }
  0x90   : > { %1358 = vmatprep.mubr.bf16.mxu1 %v2564_v24  ;;  %2349 = vmatprep.mubr.msk.bf16.mxu0 %vm1044_vm0, %v2566_v25 }
  0x97   : > { %1359 = vmatmul.mubr.bf16.gmra.mrb[52].mxu1 %v2567_v26  ;;  %2350 = vmatmul.mubr.msk.bf16.gmra.mrb[52].mxu0 %vm1044_vm0, %v2568_v27 }
  0x98   : > { %1366 = vmatprep.mubr.bf16.mxu1 %v2569_v28  ;;  %2353 = vmatprep.mubr.msk.bf16.mxu0 %vm1044_vm0, %v2571_v29 }
  0x9f   : > { %1367 = vmatmul.mubr.bf16.gmra.mrb[56].mxu1 %v2572_v30  ;;  %2354 = vmatmul.mubr.msk.bf16.gmra.mrb[56].mxu0 %vm1044_vm0, %v2573_v31 }
  0xa0   : > { %1374 = vmatprep.mubr.bf16.mxu1 %v2574_v32  ;;  %2357 = vmatprep.mubr.msk.bf16.mxu0 %vm1044_vm0, %v2576_v33 }
  0xa7   : > { %1375 = vmatmul.mubr.bf16.gmra.mrb[60].mxu1 %v2577_v34  ;;  %2358 = vmatmul.mubr.msk.bf16.gmra.mrb[60].mxu0 %vm1044_vm0, %v2578_v35 }
  0xa8   : > { %1382 = vmatprep.mubr.bf16.mxu1 %v2579_v36  ;;  %2361 = vmatprep.mubr.msk.bf16.mxu0 %vm1044_vm0, %v2581_v37 }
  0xaf   : > { %1383 = vmatmul.mubr.bf16.gmra.mrb[64].mxu1 %v2582_v38  ;;  %2362 = vmatmul.mubr.msk.bf16.gmra.mrb[64].mxu0 %vm1044_vm0, %v2583_v39 }
  0xb0   : > { %1390 = vmatprep.mubr.bf16.mxu1 %v2584_v40  ;;  %2365 = vmatprep.mubr.msk.bf16.mxu0 %vm1044_vm0, %v2586_v41 }
  0xb7   : > { %1391 = vmatmul.mubr.bf16.gmra.mrb[68].mxu1 %v2587_v42  ;;  %2366 = vmatmul.mubr.msk.bf16.gmra.mrb[68].mxu0 %vm1044_vm0, %v2588_v43 }
  0xb8   : > { %1398 = vmatprep.mubr.bf16.mxu1 %v2589_v44  ;;  %2369 = vmatprep.mubr.msk.bf16.mxu0 %vm1044_vm0, %v2591_v45 }
  0xbf   : > { %1399 = vmatmul.mubr.bf16.gmra.mrb[72].mxu1 %v2592_v46  ;;  %2370 = vmatmul.mubr.msk.bf16.gmra.mrb[72].mxu0 %vm1044_vm0, %v2593_v47 }
  0xc0   : > { %1406 = vmatprep.mubr.bf16.mxu1 %v2594_v48  ;;  %2373 = vmatprep.mubr.msk.bf16.mxu0 %vm1044_vm0, %v2596_v49 }
  0xc7   : > { %1407 = vmatmul.mubr.bf16.gmra.mrb[76].mxu1 %v2597_v50  ;;  %2374 = vmatmul.mubr.msk.bf16.gmra.mrb[76].mxu0 %vm1044_vm0, %v2598_v51 }
 0x102   : > { %v2181_v52 = vpop.f32.mrb[0].mxu1  ;;  %v2109_v53 = vpop.f32.mrb[0].mxu0 }
 0x103   : > { %v2182_v54 = vpop.f32.mrb[1].mxu1  ;;  %v2110_v55 = vpop.f32.mrb[1].mxu0 }
 0x104   : > { %v2967_v56 = vadd.f32 %v2182_v54, %v2181_v52  ;;  %v2184_v57 = vpop.f32.mrb[2].mxu1  ;;  %v2111_v58 = vadd.f32 %v2110_v55, %v2109_v53  ;;  %v2112_v59 = vpop.f32.mrb[2].mxu0 }
 0x105   : > { %v2185_v60 = vpop.f32.mrb[3].mxu1  ;;  %v2113_v61 = vpop.f32.mrb[3].mxu0 }
 0x106   : > { %v2969_v62 = vadd.f32 %v2185_v60, %v2184_v57  ;;  %v2114_v63 = vadd.f32 %v2113_v61, %v2112_v59 }
 0x10a   : > { %v2187_v0 = vpop.f32.mrb[4].mxu1  ;;  %v2115_v1 = vpop.f32.mrb[4].mxu0 }
 0x10b   : > { %v2188_v2 = vpop.f32.mrb[5].mxu1  ;;  %v2116_v3 = vpop.f32.mrb[5].mxu0 }
 0x10c   : > { %v2971_v4 = vadd.f32 %v2188_v2, %v2187_v0  ;;  %v2190_v5 = vpop.f32.mrb[6].mxu1  ;;  %v2117_v6 = vadd.f32 %v2116_v3, %v2115_v1  ;;  %v2118_v7 = vpop.f32.mrb[6].mxu0 }
 0x10d   : > { %v2191_v8 = vpop.f32.mrb[7].mxu1  ;;  %v2119_v9 = vpop.f32.mrb[7].mxu0 }
 0x10e   : > { %v2973_v10 = vadd.f32 %v2191_v8, %v2190_v5  ;;  %v2120_v11 = vadd.f32 %v2119_v9, %v2118_v7 }
 0x112   : > { %v2193_v12 = vpop.f32.mrb[8].mxu1  ;;  %v2121_v13 = vpop.f32.mrb[8].mxu0 }
 0x113   : > { %v2194_v14 = vpop.f32.mrb[9].mxu1  ;;  %v2122_v15 = vpop.f32.mrb[9].mxu0 }
 0x114   : > { %v2975_v16 = vadd.f32 %v2194_v14, %v2193_v12  ;;  %v2196_v17 = vpop.f32.mrb[10].mxu1  ;;  %v2123_v18 = vadd.f32 %v2122_v15, %v2121_v13  ;;  %v2124_v19 = vpop.f32.mrb[10].mxu0 }
 0x115   : > { %v2197_v20 = vpop.f32.mrb[11].mxu1  ;;  %v2125_v21 = vpop.f32.mrb[11].mxu0 }
 0x116   : > { %v2977_v22 = vadd.f32 %v2197_v20, %v2196_v17  ;;  %v2126_v23 = vadd.f32 %v2125_v21, %v2124_v19 }
 0x11a   : > { %v2199_v24 = vpop.f32.mrb[12].mxu1  ;;  %v2127_v25 = vpop.f32.mrb[12].mxu0 }
 0x11b   : > { %v2200_v26 = vpop.f32.mrb[13].mxu1  ;;  %v2128_v27 = vpop.f32.mrb[13].mxu0 }
 0x11c   : > { %v2979_v28 = vadd.f32 %v2200_v26, %v2199_v24  ;;  %v2202_v29 = vpop.f32.mrb[14].mxu1  ;;  %v2129_v30 = vadd.f32 %v2128_v27, %v2127_v25  ;;  %v2130_v31 = vpop.f32.mrb[14].mxu0 }
 0x11d   : > { %v2203_v32 = vpop.f32.mrb[15].mxu1  ;;  %v2131_v33 = vpop.f32.mrb[15].mxu0 }
 0x11e   : > { %v2981_v34 = vadd.f32 %v2203_v32, %v2202_v29  ;;  %v2132_v35 = vadd.f32 %v2131_v33, %v2130_v31 }
 0x122   : > { %v2221_v36 = vpop.f32.mrb[16].mxu1  ;;  %v2133_v37 = vpop.f32.mrb[16].mxu0 }
 0x123   : > { %v2222_v38 = vpop.f32.mrb[17].mxu1  ;;  %v2134_v39 = vpop.f32.mrb[17].mxu0 }
 0x124   : > { %v2223_v40 = vadd.f32 %v2222_v38, %v2221_v36  ;;  %v2224_v41 = vpop.f32.mrb[18].mxu1  ;;  %v2135_v42 = vadd.f32 %v2134_v39, %v2133_v37  ;;  %v2136_v43 = vpop.f32.mrb[18].mxu0 }
 0x125   : > { %v2225_v44 = vpop.f32.mrb[19].mxu1  ;;  %v2137_v45 = vpop.f32.mrb[19].mxu0 }
 0x126   : > { %v2226_v46 = vadd.f32 %v2225_v44, %v2224_v41  ;;  %v2138_v47 = vadd.f32 %v2137_v45, %v2136_v43  ;;  %v2983_v48 = vadd.f32 %v2223_v40, %v2111_v58 }
 0x128   : > { %v2985_v49 = vadd.f32 %v2226_v46, %v2114_v63 }
 0x12a   : > { %v2227_v50 = vpop.f32.mrb[20].mxu1  ;;  %v2139_v51 = vpop.f32.mrb[20].mxu0 }
 0x12b   : > { %v2228_v52 = vpop.f32.mrb[21].mxu1  ;;  %v2140_v53 = vpop.f32.mrb[21].mxu0 }
 0x12c   : > { %v2229_v54 = vadd.f32 %v2228_v52, %v2227_v50  ;;  %v2230_v55 = vpop.f32.mrb[22].mxu1  ;;  %v2141_v57 = vadd.f32 %v2140_v53, %v2139_v51  ;;  %v2142_v59 = vpop.f32.mrb[22].mxu0 }
 0x12d   : > { %v2231_v60 = vpop.f32.mrb[23].mxu1  ;;  %v2143_v61 = vpop.f32.mrb[23].mxu0 }
 0x12e   : > { %v2232_v0 = vadd.f32 %v2231_v60, %v2230_v55  ;;  %v2144_v1 = vadd.f32 %v2143_v61, %v2142_v59  ;;  %v2987_v2 = vadd.f32 %v2229_v54, %v2117_v6 }
 0x130   : > { %v2989_v3 = vadd.f32 %v2232_v0, %v2120_v11 }
 0x132   : > { %v2233_v58 = vpop.f32.mrb[24].mxu1  ;;  %v2145_v5 = vpop.f32.mrb[24].mxu0 }
 0x133   : > { %v2234_v63 = vpop.f32.mrb[25].mxu1  ;;  %v2146_v7 = vpop.f32.mrb[25].mxu0 }
 0x134   : > { %v2235_v8 = vadd.f32 %v2234_v63, %v2233_v58  ;;  %v2236_v9 = vpop.f32.mrb[26].mxu1  ;;  %v2147_v12 = vadd.f32 %v2146_v7, %v2145_v5  ;;  %v2148_v13 = vpop.f32.mrb[26].mxu0 }
 0x135   : > { %v2237_v14 = vpop.f32.mrb[27].mxu1  ;;  %v2149_v15 = vpop.f32.mrb[27].mxu0 }
 0x136   : > { %v2238_v17 = vadd.f32 %v2237_v14, %v2236_v9  ;;  %v2150_v19 = vadd.f32 %v2149_v15, %v2148_v13  ;;  %v2991_v20 = vadd.f32 %v2235_v8, %v2123_v18 }
 0x138   : > { %v2993_v21 = vadd.f32 %v2238_v17, %v2126_v23 }
 0x13a   : > { %v2239_v6 = vpop.f32.mrb[28].mxu1  ;;  %v2151_v24 = vpop.f32.mrb[28].mxu0 }
 0x13b   : > { %v2240_v11 = vpop.f32.mrb[29].mxu1  ;;  %v2152_v25 = vpop.f32.mrb[29].mxu0 }
 0x13c   : > { %v2241_v26 = vadd.f32 %v2240_v11, %v2239_v6  ;;  %v2242_v27 = vpop.f32.mrb[30].mxu1  ;;  %v2995_v29 = vadd.f32 %v2152_v25, %v2151_v24  ;;  %v2154_v31 = vpop.f32.mrb[30].mxu0 }
 0x13d   : > { %v2243_v32 = vpop.f32.mrb[31].mxu1  ;;  %v2155_v33 = vpop.f32.mrb[31].mxu0 }
 0x13e   : > { %v2244_v36 = vadd.f32 %v2243_v32, %v2242_v27  ;;  %v2156_v37 = vadd.f32 %v2155_v33, %v2154_v31  ;;  %v2997_v38 = vadd.f32 %v2241_v26, %v2129_v30 }
 0x140   : > { %v2999_v39 = vadd.f32 %v2244_v36, %v2132_v35 }
 0x142   : > { %v2245_v18 = vpop.f32.mrb[32].mxu1  ;;  %v2157_v23 = vpop.f32.mrb[32].mxu0 }
 0x143   : > { %v2246_v40 = vpop.f32.mrb[33].mxu1  ;;  %v2158_v41 = vpop.f32.mrb[33].mxu0 }
 0x144   : > { %v2247_v43 = vadd.f32 %v2246_v40, %v2245_v18  ;;  %v2248_v44 = vpop.f32.mrb[34].mxu1  ;;  %v3001_v45 = vadd.f32 %v2158_v41, %v2157_v23  ;;  %v2160_v46 = vpop.f32.mrb[34].mxu0 }
 0x145   : > { %v2249_v50 = vpop.f32.mrb[35].mxu1  ;;  %v2161_v51 = vpop.f32.mrb[35].mxu0 }
 0x146   : > { %v2250_v52 = vadd.f32 %v2249_v50, %v2248_v44  ;;  %v3003_v53 = vadd.f32 %v2161_v51, %v2160_v46  ;;  %v3005_v54 = vadd.f32 %v2247_v43, %v2135_v42 }
 0x148   : > { %v3007_v30 = vadd.f32 %v2250_v52, %v2138_v47 }
 0x14a   : > { %v2251_v35 = vpop.f32.mrb[36].mxu1  ;;  %v2163_v55 = vpop.f32.mrb[36].mxu0 }
 0x14b   : > { %v2252_v59 = vpop.f32.mrb[37].mxu1  ;;  %v2164_v60 = vpop.f32.mrb[37].mxu0 }
 0x14c   : > { %v2253_v61 = vadd.f32 %v2252_v59, %v2251_v35  ;;  %v2254_v0 = vpop.f32.mrb[38].mxu1  ;;  %v3009_v58 = vadd.f32 %v2164_v60, %v2163_v55  ;;  %v2166_v5 = vpop.f32.mrb[38].mxu0  ;;  %v3040_v59 = vld [vmem:[%s3208_s2] ss:$0 sm:$0xff] }
 0x14d   : > { %v2255_v63 = vpop.f32.mrb[39].mxu1  ;;  %v2167_v7 = vpop.f32.mrb[39].mxu0 }
 0x14e   : > { %v2256_v8 = vadd.f32 %v2255_v63, %v2254_v0  ;;  %v3011_v9 = vadd.f32 %v2167_v7, %v2166_v5  ;;  %v3013_v13 = vadd.f32 %v2253_v61, %v2141_v57 }
 0x150   : > { %v3015_v42 = vadd.f32 %v2256_v8, %v2144_v1 }
 0x152   : > { %v2257_v47 = vpop.f32.mrb[40].mxu1  ;;  %v2169_v14 = vpop.f32.mrb[40].mxu0 }
 0x153   : > { %v2258_v15 = vpop.f32.mrb[41].mxu1  ;;  %v2170_v17 = vpop.f32.mrb[41].mxu0 }
 0x154   : > { %v2259_v6 = vadd.f32 %v2258_v15, %v2257_v47  ;;  %v2260_v24 = vpop.f32.mrb[42].mxu1  ;;  %v3017_v11 = vadd.f32 %v2170_v17, %v2169_v14  ;;  %v2172_v25 = vpop.f32.mrb[42].mxu0 }
 0x155   : > { %v2261_v26 = vpop.f32.mrb[43].mxu1  ;;  %v2173_v27 = vpop.f32.mrb[43].mxu0 }
 0x156   : > { %v2262_v31 = vadd.f32 %v2261_v26, %v2260_v24  ;;  %v3019_v32 = vadd.f32 %v2173_v27, %v2172_v25  ;;  %v3021_v33 = vadd.f32 %v2259_v6, %v2147_v12 }
 0x158   : > { %v3023_v57 = vadd.f32 %v2262_v31, %v2150_v19 }
 0x15a   : > { %v2263_v1 = vpop.f32.mrb[44].mxu1  ;;  %v2175_v36 = vpop.f32.mrb[44].mxu0 }
 0x15b   : > { %v2264_v18 = vpop.f32.mrb[45].mxu1  ;;  %v2176_v23 = vpop.f32.mrb[45].mxu0 }
 0x15c   : > { %v2265_v40 = vadd.f32 %v2264_v18, %v2263_v1  ;;  %v2266_v41 = vpop.f32.mrb[46].mxu1  ;;  %v3025_v43 = vadd.f32 %v2176_v23, %v2175_v36  ;;  %v2178_v44 = vpop.f32.mrb[46].mxu0 }
 0x15d   : > { %v2267_v46 = vpop.f32.mrb[47].mxu1  ;;  %v2179_v50 = vpop.f32.mrb[47].mxu0 }
 0x15e   : > { %v2268_v51 = vadd.f32 %v2267_v46, %v2266_v41  ;;  %v3027_v52 = vadd.f32 %v2179_v50, %v2178_v44  ;;  %v3031_v12 = vadd.f32 %v2265_v40, %v2995_v29 }
 0x160   : > { %v3033_v19 = vadd.f32 %v2268_v51, %v2156_v37 }
 0x162   : > { %v2269_v35 = vpop.f32.mrb[48].mxu1  ;;  %v2347_v55 = vpop.f32.mrb[48].mxu0 }
 0x163   : > { %v1458_v60 = vadd.f32 %v2347_v55, %v2987_v2  ;;  %v2270_v61 = vpop.f32.mrb[49].mxu1  ;;  %v1449_v0 = vpop.f32.mrb[49].mxu0 }
 0x164   : > { %v2271_v5 = vadd.f32 %v2270_v61, %v2269_v35  ;;  %v1450_v63 = vadd.f32 %v1449_v0, %v2983_v48  ;;  %v2272_v29 = vpop.f32.mrb[50].mxu1  ;;  %v2348_v7 = vpop.f32.mrb[50].mxu0 }
 0x165   : > { %v1756_v37 = vadd.f32 %v3040_v59, %v1458_v60  ;;  %v1461_v8 = vadd.f32 %v2348_v7, %v2989_v3  ;;  %v2273_v47 = vpop.f32.mrb[51].mxu1  ;;  %v1452_v14 = vpop.f32.mrb[51].mxu0 }
 0x166   : > { %v1754_v15 = vadd.f32 %v3040_v59, %v1450_v63  ;;  %v2274_v17 = vadd.f32 %v2273_v47, %v2272_v29  ;;  %v1453_v6 = vadd.f32 %v1452_v14, %v2985_v49  ;;  %v3049_v2 = vadd.f32 %v2271_v5, %v3001_v45 }
 0x167   : > { %1788 = vst [vmem:[%s3051_s21 + $0x10] sm:$0xff] %v1756_v37  ;;  %v1757_v48 = vadd.f32 %v3040_v59, %v1461_v8 }
 0x168   : > { %1786 = vst [vmem:[%s3051_s21] sm:$0xff] %v1754_v15  ;;  %v1755_v3 = vadd.f32 %v3040_v59, %v1453_v6  ;;  %v3058_v24 = vadd.f32 %v2274_v17, %v3003_v53 }
 0x169   : > { %1789 = vst [vmem:[%s3051_s21 + $0x18] sm:$0xff] %v1757_v48 }
 0x16a   : > { %1787 = vst [vmem:[%s3051_s21 + $0x8] sm:$0xff] %v1755_v3  ;;  %v2275_v49 = vpop.f32.mrb[52].mxu1  ;;  %v2351_v45 = vpop.f32.mrb[52].mxu0 }
 0x16b   : > { %v1474_v25 = vadd.f32 %v2351_v45, %v2997_v38  ;;  %v2276_v26 = vpop.f32.mrb[53].mxu1  ;;  %v1465_v27 = vpop.f32.mrb[53].mxu0 }
 0x16c   : > { %v2277_v31 = vadd.f32 %v2276_v26, %v2275_v49  ;;  %v1466_v1 = vadd.f32 %v1465_v27, %v2991_v20  ;;  %v2278_v36 = vpop.f32.mrb[54].mxu1  ;;  %v2352_v18 = vpop.f32.mrb[54].mxu0 }
 0x16d   : > { %v1760_v53 = vadd.f32 %v3040_v59, %v1474_v25  ;;  %v1477_v23 = vadd.f32 %v2352_v18, %v2999_v39  ;;  %v2279_v40 = vpop.f32.mrb[55].mxu1  ;;  %v1468_v41 = vpop.f32.mrb[55].mxu0 }
 0x16e   : > { %v1758_v44 = vadd.f32 %v3040_v59, %v1466_v1  ;;  %v2280_v46 = vadd.f32 %v2279_v40, %v2278_v36  ;;  %v1469_v38 = vadd.f32 %v1468_v41, %v2993_v21  ;;  %v1361_v50 = vadd.f32 %v2277_v31, %v3009_v58 }
 0x16f   : > { %1792 = vst [vmem:[%s3051_s21 + $0x30] sm:$0xff] %v1760_v53  ;;  %v1761_v20 = vadd.f32 %v3040_v59, %v1477_v23 }
 0x170   : > { %1790 = vst [vmem:[%s3051_s21 + $0x20] sm:$0xff] %v1758_v44  ;;  %v1759_v51 = vadd.f32 %v3040_v59, %v1469_v38  ;;  %v1364_v35 = vadd.f32 %v2280_v46, %v3011_v9 }
 0x171   : > { %1793 = vst [vmem:[%s3051_s21 + $0x38] sm:$0xff] %v1761_v20 }
 0x172   : > { %1791 = vst [vmem:[%s3051_s21 + $0x28] sm:$0xff] %v1759_v51  ;;  %v2281_v39 = vpop.f32.mrb[56].mxu1  ;;  %v2355_v55 = vpop.f32.mrb[56].mxu0 }
 0x173   : > { %v1490_v60 = vadd.f32 %v2355_v55, %v3013_v13  ;;  %v2282_v61 = vpop.f32.mrb[57].mxu1  ;;  %v1481_v21 = vpop.f32.mrb[57].mxu0 }
 0x174   : > { %v2283_v0 = vadd.f32 %v2282_v61, %v2281_v39  ;;  %v1482_v58 = vadd.f32 %v1481_v21, %v3005_v54  ;;  %v2284_v5 = vpop.f32.mrb[58].mxu1  ;;  %v2356_v63 = vpop.f32.mrb[58].mxu0 }
 0x175   : > { %v1764_v29 = vadd.f32 %v3040_v59, %v1490_v60  ;;  %v1493_v9 = vadd.f32 %v2356_v63, %v3015_v42  ;;  %v2285_v7 = vpop.f32.mrb[59].mxu1  ;;  %v1484_v37 = vpop.f32.mrb[59].mxu0 }
 0x176   : > { %v1762_v8 = vadd.f32 %v3040_v59, %v1482_v58  ;;  %v2286_v47 = vadd.f32 %v2285_v7, %v2284_v5  ;;  %v1485_v13 = vadd.f32 %v1484_v37, %v3007_v30  ;;  %v1369_v14 = vadd.f32 %v2283_v0, %v3017_v11 }
 0x177   : > { %1796 = vst [vmem:[%s3051_s21 + $0x50] sm:$0xff] %v1764_v29  ;;  %v1765_v54 = vadd.f32 %v3040_v59, %v1493_v9 }
 0x178   : > { %1794 = vst [vmem:[%s3051_s21 + $0x40] sm:$0xff] %v1762_v8  ;;  %v1763_v15 = vadd.f32 %v3040_v59, %v1485_v13  ;;  %v3088_v17 = vadd.f32 %v2286_v47, %v3019_v32 }
 0x179   : > { %1797 = vst [vmem:[%s3051_s21 + $0x58] sm:$0xff] %v1765_v54 }
 0x17a   : > { %1795 = vst [vmem:[%s3051_s21 + $0x48] sm:$0xff] %v1763_v15  ;;  %v2287_v42 = vpop.f32.mrb[60].mxu1  ;;  %v2359_v6 = vpop.f32.mrb[60].mxu0 }
 0x17b   : > { %v1506_v48 = vadd.f32 %v2359_v6, %v3031_v12  ;;  %v2288_v3 = vpop.f32.mrb[61].mxu1  ;;  %v1497_v30 = vpop.f32.mrb[61].mxu0 }
 0x17c   : > { %v2289_v11 = vadd.f32 %v2288_v3, %v2287_v42  ;;  %v1498_v49 = vadd.f32 %v1497_v30, %v3021_v33  ;;  %v2290_v45 = vpop.f32.mrb[62].mxu1  ;;  %v2360_v25 = vpop.f32.mrb[62].mxu0 }
 0x17d   : > { %v1768_v32 = vadd.f32 %v3040_v59, %v1506_v48  ;;  %v1509_v26 = vadd.f32 %v2360_v25, %v3033_v19  ;;  %v2291_v27 = vpop.f32.mrb[63].mxu1  ;;  %v1500_v31 = vpop.f32.mrb[63].mxu0 }
 0x17e   : > { %v1766_v1 = vadd.f32 %v3040_v59, %v1498_v49  ;;  %v2292_v36 = vadd.f32 %v2291_v27, %v2290_v45  ;;  %v1501_v12 = vadd.f32 %v1500_v31, %v3023_v57  ;;  %v1377_v18 = vadd.f32 %v2289_v11, %v3025_v43 }
 0x17f   : > { %1800 = vst [vmem:[%s3051_s21 + $0x70] sm:$0xff] %v1768_v32  ;;  %v1769_v33 = vadd.f32 %v3040_v59, %v1509_v26 }
 0x180   : > { %1798 = vst [vmem:[%s3051_s21 + $0x60] sm:$0xff] %v1766_v1  ;;  %v1767_v53 = vadd.f32 %v3040_v59, %v1501_v12  ;;  %v1380_v23 = vadd.f32 %v2292_v36, %v3027_v52 }
 0x181   : > { %1801 = vst [vmem:[%s3051_s21 + $0x78] sm:$0xff] %v1769_v33 }
 0x182   : > { %1799 = vst [vmem:[%s3051_s21 + $0x68] sm:$0xff] %v1767_v53  ;;  %v2293_v19 = vpop.f32.mrb[64].mxu1  ;;  %v2363_v40 = vpop.f32.mrb[64].mxu0 }
 0x183   : > { %v1522_v41 = vadd.f32 %v2363_v40, %v1361_v50  ;;  %v2294_v44 = vpop.f32.mrb[65].mxu1  ;;  %v1513_v46 = vpop.f32.mrb[65].mxu0 }
 0x184   : > { %v2295_v57 = vadd.f32 %v2294_v44, %v2293_v19  ;;  %v1514_v43 = vadd.f32 %v1513_v46, %v3049_v2  ;;  %v2296_v38 = vpop.f32.mrb[66].mxu1  ;;  %v2364_v20 = vpop.f32.mrb[66].mxu0 }
 0x185   : > { %v1772_v51 = vadd.f32 %v3040_v59, %v1522_v41  ;;  %v1525_v39 = vadd.f32 %v2364_v20, %v1364_v35  ;;  %v2297_v52 = vpop.f32.mrb[67].mxu1  ;;  %v1516_v55 = vpop.f32.mrb[67].mxu0 }
 0x186   : > { %v1770_v60 = vadd.f32 %v3040_v59, %v1514_v43  ;;  %v2298_v61 = vadd.f32 %v2297_v52, %v2296_v38  ;;  %v1517_v50 = vadd.f32 %v1516_v55, %v3058_v24  ;;  %v1385_v21 = vadd.f32 %v2295_v57, %v2967_v56 }
 0x187   : > { %1804 = vst [vmem:[%s3051_s21 + $0x90] sm:$0xff] %v1772_v51  ;;  %v1773_v0 = vadd.f32 %v3040_v59, %v1525_v39 }
 0x188   : > { %1802 = vst [vmem:[%s3051_s21 + $0x80] sm:$0xff] %v1770_v60  ;;  %v1771_v2 = vadd.f32 %v3040_v59, %v1517_v50  ;;  %v1388_v58 = vadd.f32 %v2298_v61, %v2969_v62 }
 0x189   : > { %1805 = vst [vmem:[%s3051_s21 + $0x98] sm:$0xff] %v1773_v0 }
 0x18a   : > { %1803 = vst [vmem:[%s3051_s21 + $0x88] sm:$0xff] %v1771_v2  ;;  %v2299_v35 = vpop.f32.mrb[68].mxu1  ;;  %v2367_v5 = vpop.f32.mrb[68].mxu0 }
 0x18b   : > { %v1538_v63 = vadd.f32 %v2367_v5, %v1377_v18  ;;  %v2300_v29 = vpop.f32.mrb[69].mxu1  ;;  %v1529_v9 = vpop.f32.mrb[69].mxu0 }
 0x18c   : > { %v2301_v24 = vadd.f32 %v2300_v29, %v2299_v35  ;;  %v1530_v7 = vadd.f32 %v1529_v9, %v1369_v14  ;;  %v2302_v56 = vpop.f32.mrb[70].mxu1  ;;  %v2368_v37 = vpop.f32.mrb[70].mxu0 }
 0x18d   : > { %v1776_v8 = vadd.f32 %v3040_v59, %v1538_v63  ;;  %v1541_v47 = vadd.f32 %v2368_v37, %v1380_v23  ;;  %v2303_v13 = vpop.f32.mrb[71].mxu1  ;;  %v1532_v62 = vpop.f32.mrb[71].mxu0 }
 0x18e   : > { %v1774_v54 = vadd.f32 %v3040_v59, %v1530_v7  ;;  %v2304_v15 = vadd.f32 %v2303_v13, %v2302_v56  ;;  %v1533_v42 = vadd.f32 %v1532_v62, %v3088_v17  ;;  %v1393_v6 = vadd.f32 %v2301_v24, %v2971_v4 }
 0x18f   : > { %1808 = vst [vmem:[%s3051_s21 + $0xb0] sm:$0xff] %v1776_v8  ;;  %v1777_v48 = vadd.f32 %v3040_v59, %v1541_v47 }
 0x190   : > { %1806 = vst [vmem:[%s3051_s21 + $0xa0] sm:$0xff] %v1774_v54  ;;  %v1775_v14 = vadd.f32 %v3040_v59, %v1533_v42  ;;  %v1396_v3 = vadd.f32 %v2304_v15, %v2973_v10 }
 0x191   : > { %1809 = vst [vmem:[%s3051_s21 + $0xb8] sm:$0xff] %v1777_v48 }
 0x192   : > { %1807 = vst [vmem:[%s3051_s21 + $0xa8] sm:$0xff] %v1775_v14  ;;  %v2305_v30 = vpop.f32.mrb[72].mxu1  ;;  %v2371_v11 = vpop.f32.mrb[72].mxu0 }
 0x193   : > { %v1554_v49 = vadd.f32 %v2371_v11, %v1393_v6  ;;  %v2306_v45 = vpop.f32.mrb[73].mxu1  ;;  %v1545_v25 = vpop.f32.mrb[73].mxu0 }
 0x194   : > { %v2307_v17 = vadd.f32 %v2306_v45, %v2305_v30  ;;  %v1546_v32 = vadd.f32 %v1545_v25, %v1385_v21  ;;  %v2308_v4 = vpop.f32.mrb[74].mxu1  ;;  %v2372_v26 = vpop.f32.mrb[74].mxu0 }
 0x195   : > { %v1780_v27 = vadd.f32 %v3040_v59, %v1554_v49  ;;  %v1557_v31 = vadd.f32 %v2372_v26, %v1396_v3  ;;  %v2309_v1 = vpop.f32.mrb[75].mxu1  ;;  %v1548_v10 = vpop.f32.mrb[75].mxu0 }
 0x196   : > { %v1778_v36 = vadd.f32 %v3040_v59, %v1546_v32  ;;  %v2310_v12 = vadd.f32 %v2309_v1, %v2308_v4  ;;  %v1549_v18 = vadd.f32 %v1548_v10, %v1388_v58  ;;  %v1401_v33 = vadd.f32 %v2307_v17, %v2975_v16 }
 0x197   : > { %1812 = vst [vmem:[%s3051_s21 + $0xd0] sm:$0xff] %v1780_v27  ;;  %v1781_v53 = vadd.f32 %v3040_v59, %v1557_v31 }
 0x198   : > { %1810 = vst [vmem:[%s3051_s21 + $0xc0] sm:$0xff] %v1778_v36  ;;  %v1779_v23 = vadd.f32 %v3040_v59, %v1549_v18  ;;  %v1404_v19 = vadd.f32 %v2310_v12, %v2977_v22 }
 0x199   : > { %1813 = vst [vmem:[%s3051_s21 + $0xd8] sm:$0xff] %v1781_v53 }
 0x19a   : > { %1811 = vst [vmem:[%s3051_s21 + $0xc8] sm:$0xff] %v1779_v23  ;;  %v2311_v40 = vpop.f32.mrb[76].mxu1  ;;  %v2375_v41 = vpop.f32.mrb[76].mxu0 }
 0x19b   : > { %v2312_v44 = vpop.f32.mrb[77].mxu1  ;;  %v1561_v46 = vpop.f32.mrb[77].mxu0 }
 0x19c   : > { %v2313_v57 = vadd.f32 %v2312_v44, %v2311_v40  ;;  %v1562_v43 = vadd.f32 %v1561_v46, %v1401_v33  ;;  %v2314_v16 = vpop.f32.mrb[78].mxu1  ;;  %v2376_v38 = vpop.f32.mrb[78].mxu0 }
 0x19d   : > { %v2315_v20 = vpop.f32.mrb[79].mxu1  ;;  %v1564_v51 = vpop.f32.mrb[79].mxu0 }
 0x19e   : > { %v1409_v39 = vadd.f32 %v2313_v57, %v2979_v28  ;;  %v1782_v22 = vadd.f32 %v3040_v59, %v1562_v43  ;;  %v2316_v52 = vadd.f32 %v2315_v20, %v2314_v16  ;;  %v1565_v55 = vadd.f32 %v1564_v51, %v1404_v19 }
 0x1a0   : > { %v1570_v60 = vadd.f32 %v2375_v41, %v1409_v39  ;;  %1814 = vst [vmem:[%s3051_s21 + $0xe0] sm:$0xff] %v1782_v22  ;;  %v1412_v61 = vadd.f32 %v2316_v52, %v2981_v34  ;;  %v1783_v50 = vadd.f32 %v3040_v59, %v1565_v55 }
 0x1a2   : > { %v1784_v21 = vadd.f32 %v3040_v59, %v1570_v60  ;;  %v1573_v0 = vadd.f32 %v2376_v38, %v1412_v61  ;;  %1815 = vst [vmem:[%s3051_s21 + $0xe8] sm:$0xff] %v1783_v50 }
 0x1a4   : > { %1816 = vst [vmem:[%s3051_s21 + $0xf0] sm:$0xff] %v1784_v21  ;;  %v1785_v28 = vadd.f32 %v3040_v59, %v1573_v0 }
 0x1a6   : > { %1817 = vst [vmem:[%s3051_s21 + $0xf8] sm:$0xff] %v1785_v28 }
 0x1a7   : > { %2612 = shalt.err (!%p2609_p5)
}
 0x1a8   : > { %s2613_s8 = scalar_lea.hbm %s3151_s30, 4096  ;;  %s2617_s5 = scalar_lea.hbm %s3209_s3, 8192 }
 0x1a9   : > { %p2614_p6 = scmp.ne.s32.totalorder %s3151_s30, %s2613_s8  ;;  %p2618_p10 = scmp.lt.u32.totalorder %s3151_s30, %s3209_s3 }
 0x1aa   : > { %p2619_p11 = scmp.lt.u32.totalorder %s2617_s5, %s2613_s8  ;;  %p2621_p13 = scmp.lt.u32.totalorder %s2613_s8, %s3151_s30 }
 0x1ab   : > { %p2615_p7 = pnand %p2614_p6, %p2742_p4 }
 0x1ac   : > { %p2620_p12 = por %p2619_p11, %p2618_p10 }
 0x1ad   : > { %p2616_p9 = pneg %p2615_p7 }
 0x1ae   : > { %p2622_p0 = por %p2621_p13, %p2620_p12 }
 0x1b0   : > { %p2623_p1 = pnand %p2622_p0, %p2616_p9 }
 0x1b2   : > { %2626 = shalt.err (!%p2623_p1)
}
 0x1b3   : > { %s2680_s19 = smov 128   ;;  %s2681_s21 = smov 8  }
 0x1b4   : > { %2394 = dma.vmem_to_hbm [thread:$0]  (%p2742_p4), %s3153_s26, 4096, %s3151_s30, %s3160_s15, %s2680_s19, %s2680_s19, %s2681_s21  }
 0x1b5 PF: > { %p2400_p2 = scmp.ge.s32.totalorder %s2677_s17, 2  ;;  %s1848_s23 = sand.u32 1, %s2657_s12  }
 0x1b6   : > { %s1849_s27 = scalar_lea.sflag [#allocation3], %s1848_s23 }
 0x1b7   : > { %p2397_p3 = pnand %p2400_p2, %p2749_p8 }
 0x1b9   : > { %2652 = dma.done.wait (!%p2397_p3), %s1849_s27, 4096  }
 0x1ba   : > { %2654 = vsyncadd (!%p2397_p3), %s1849_s27, 4294963200  ;;  %s16_s17 = sadd.s32 1, %s2677_s17   ;;  %s3212_s12 = smov %s2661_s13 }
 0x1bb   : > { %p13_p5 = scmp.ge.s32.totalorder %s16_s17, 4   ;;  %s3213_s13 = smov %s2665_s14 }
 0x1bc   : > { %s3214_s14 = smov %s2755_s25  ;;  %s3215_s15 = smov %s2673_s16 }
 0x1bd   : > { %s3216_s16 = smov %s3218_s20  ;;  %15 = sbr.rel (!%p13_p5) target bundleno = 4 (0x4), region = 85 }
 0x1c4   :  { %1854 = vsyncpa [#allocation3], 1 }
 0x1c5   :  { %1856 = vsyncpa [#allocation3 + $0x1], 1 }

</bundles_post_ra>
